<compile_context>
chip_gen: v5e
topology: v5e:2x2
jax: 0.10.0
libtpu: 0.0.40
codegen_flags: <defaults>
</compile_context>

<pallas_src>
import math

import jax
import jax.numpy as jnp
from jax.experimental import pallas as pl
from jax.experimental.pallas import tpu as pltpu

B, C, H, W = 2, 4, 16, 16
K = 4                      # n_components of the wrapped module


def _affine_kernel(x_ref, sb_ref, y_ref):
    # x_ref : (br, bl)  streamed tile of the fused (B*C, H*W) f32 view
    # sb_ref: (br, 2)   packed per-row [scale, bias], resident across HW axis
    # y_ref : (br, bl)
    scale = sb_ref[:, 0:1]                       # (br, 1) broadcast over lanes
    bias = sb_ref[:, 1:2]                        # (br, 1)
    y_ref[...] = (x_ref[...] * scale + bias).astype(y_ref.dtype)


def _affine_pallas(x2d, sb, *, block_rows=512, block_lanes=1024):
    """y2d = x2d * sb[:, 0:1] + sb[:, 1:2], tiled over (rows, lanes)."""
    rows, lanes = x2d.shape
    # Largest block that fits the budget; at toy size this is the full array
    # (still (8,128)-aligned: rows=8, lanes=256).
    br = rows if rows <= block_rows else block_rows
    bl = lanes if lanes <= block_lanes else block_lanes
    grid = (pl.cdiv(rows, br), pl.cdiv(lanes, bl))

    nelem = rows * lanes
    itemsize = jnp.dtype(x2d.dtype).itemsize
    cost = pl.CostEstimate(
        flops=2 * nelem,                          # one mul + one add per elem
        transcendentals=0,                        # exp() lives in the wrapper
        bytes_accessed=2 * nelem * itemsize + sb.size * 4,
    )

    return pl.pallas_call(
        _affine_kernel,
        out_shape=jax.ShapeDtypeStruct((rows, lanes), x2d.dtype),
        grid=grid,
        in_specs=[
            pl.BlockSpec((br, bl), lambda i, j: (i, j)),
            # Constant along the lane (HW) grid axis -> parameter block stays
            # resident in VMEM instead of being re-DMA'd every lane step.
            pl.BlockSpec((br, 2), lambda i, j: (i, 0)),
        ],
        out_specs=pl.BlockSpec((br, bl), lambda i, j: (i, j)),
        compiler_params=pltpu.CompilerParams(
            # Row axis independent -> megacore sharding on v7x; lane axis
            # sequential so the resident parameter block is reused in order.
            dimension_semantics=("parallel", "arbitrary"),
        ),
        cost_estimate=cost,
    )(x2d, sb)


def merge_logdets_forward(x_nchw, log_scale, bias, comp_logdet, fixed):
    """Forward pass of MergeLogDets(module)(x, fixed)."""
    Bn, Cn, Hn, Wn = x_nchw.shape
    HWn = Hn * Wn
    Kn = comp_logdet.shape[0]

    # Tiny parameter-side precompute (C- / K-length, not the streamed tensor).
    ls = log_scale.astype(jnp.float32)
    scale = jnp.exp(ls)                                                   # (C,)
    ld_comp = jnp.float32(HWn) * jnp.sum(ls) + comp_logdet.astype(jnp.float32)  # (K,)

    # Packed per-row [scale, bias] for the fused (B*C) row axis.
    sb = jnp.stack([scale, bias.astype(jnp.float32)], axis=-1)            # (C, 2)
    sb = jnp.tile(sb, (Bn, 1))                                            # (B*C, 2)

    # Streamed affine flow: single Pallas kernel over the dense 2D view.
    x2d = x_nchw.reshape(Bn * Cn, HWn)
    y2d = _affine_pallas(x2d, sb)
    y = y2d.reshape(Bn, Cn, Hn, Wn)

    # Per-component logdets (x-independent for this wrapped module).
    logdets_pc = jnp.broadcast_to(ld_comp[None, :], (Bn, Kn))
    if fixed.get('y', None) is not None:
        # Branch where logdets are NOT merged (matches the PyTorch spec).
        return y, logdets_pc

    # MergeLogDets: logsumexp over components minus log(K).  O(K) scalar work,
    # kept out of the streamed kernel per review.
    merged = jax.nn.logsumexp(ld_comp) - jnp.float32(math.log(Kn))        # ()
    # TODO(synk): a general wrapped flow has x-dependent per-sample logdets;
    # this broadcast is valid only because the synthesized module's is not.
    logdets = jnp.broadcast_to(merged, (Bn,))
    return y, logdets


if __name__ == "__main__":
    key = jax.random.PRNGKey(0)
    kx, _ = jax.random.split(key)

    # Deterministic inputs / parameters.
    x = jax.random.normal(kx, (B, C, H, W), dtype=jnp.float32)
    log_scale = 0.05 * jnp.arange(C, dtype=jnp.float32) - 0.1
    bias = 0.01 * jnp.arange(C, dtype=jnp.float32)
    comp_logdet = 0.3 * jnp.arange(K, dtype=jnp.float32) - 0.5

    fixed = {'y': None}
    y, logdets = merge_logdets_forward(x, log_scale, bias, comp_logdet, fixed)
    y = jax.block_until_ready(y)
    logdets = jax.block_until_ready(logdets)

    # Pure-JAX reference for verification.
    y_ref = x * jnp.exp(log_scale)[None, :, None, None] + bias[None, :, None, None]
    ld_per_comp = (jnp.float32(H * W) * jnp.sum(log_scale)
                   + comp_logdet)[None, :]                    # (1, K)
    ld_per_comp = jnp.broadcast_to(ld_per_comp, (B, K))
    ld_ref = jax.nn.logsumexp(ld_per_comp, axis=1) - math.log(K)

    assert y.shape == (B, C, H, W)
    assert logdets.shape == (B,)
    assert jnp.allclose(y, y_ref, atol=1e-5, rtol=1e-5)
    assert jnp.allclose(logdets, ld_ref, atol=1e-5, rtol=1e-5)

    print("KERNEL_OK")
</pallas_src>

<mosaic_0001>
module attributes {stable_mosaic.version = 11 : i64} {
  func.func @_affine_kernel(%arg0: i32, %arg1: i32, %arg2: memref<8x256xf32, #tpu.memory_space<vmem>>, %arg3: memref<8x2xf32, #tpu.memory_space<vmem>>, %arg4: memref<8x256xf32, #tpu.memory_space<vmem>>) attributes {dimension_semantics = [#tpu.dimension_semantics<parallel>, #tpu.dimension_semantics<arbitrary>], iteration_bounds = array<i64: 1, 1>, scalar_prefetch = 0 : i64, scratch_operands = 0 : i64, tpu.core_type = #tpu.core_type<tc>, window_params = [{transform_indices = @transform_0, window_bounds = array<i64: 8, 256>}, {transform_indices = @transform_1, window_bounds = array<i64: 8, 2>}, {transform_indices = @transform_2, window_bounds = array<i64: 8, 256>}]} {
    %c0 = arith.constant 0 : index
    %c0_0 = arith.constant 0 : index
    %0 = vector.load %arg3[%c0, %c0_0] : memref<8x2xf32, #tpu.memory_space<vmem>>, vector<8x1xf32>
    %c0_1 = arith.constant 0 : index
    %c1 = arith.constant 1 : index
    %1 = vector.load %arg3[%c0_1, %c1] : memref<8x2xf32, #tpu.memory_space<vmem>>, vector<8x1xf32>
    %c0_2 = arith.constant 0 : index
    %c0_3 = arith.constant 0 : index
    %2 = vector.load %arg2[%c0_2, %c0_3] : memref<8x256xf32, #tpu.memory_space<vmem>>, vector<8x256xf32>
    %3 = vector.broadcast %0 : vector<8x1xf32> to vector<8x256xf32>
    %4 = arith.mulf %2, %3 : vector<8x256xf32>
    %5 = vector.broadcast %1 : vector<8x1xf32> to vector<8x256xf32>
    %6 = arith.addf %4, %5 : vector<8x256xf32>
    %c0_4 = arith.constant 0 : index
    %c0_5 = arith.constant 0 : index
    %7 = vector.load %arg4[%c0_4, %c0_5] : memref<8x256xf32, #tpu.memory_space<vmem>>, vector<8x256xf32>
    tpu.vector_store %arg4[%c0_4, %c0_5], %6 {strides = array<i32>} : memref<8x256xf32, #tpu.memory_space<vmem>>, vector<8x256xf32>,
    return
  }
  func.func @transform_0(%arg0: i32, %arg1: i32) -> (i32, i32) {
    %c0_i32 = arith.constant 0 : i32
    return %arg0, %arg1 : i32, i32
  }
  func.func @transform_1(%arg0: i32, %arg1: i32) -> (i32, i32) {
    %c0_i32 = arith.constant 0 : i32
    %c0_i32_0 = arith.constant 0 : i32
    return %arg0, %c0_i32 : i32, i32
  }
  func.func @transform_2(%arg0: i32, %arg1: i32) -> (i32, i32) {
    %c0_i32 = arith.constant 0 : i32
    return %arg0, %arg1 : i32, i32
  }
}

</mosaic_0001>

<bundles_post_ra>
// kernel: tpu_custom_call.1
= control target key start
LH: loop header
LB: loop body
LE: loop exit
PB: predicated region body
PF: predicated region fallthrough
CT: control target
= control target key end

     0   :  { %7 = vsyncpa [#allocation3], 0  ;;  %s147_s0 = inlined_call_operand.hbm [shape: f32[8,256], index: 0, kind: input, shape index: {}]   ;;  %s148_s1 = inlined_call_operand.vmem [shape: f32[8,2], index: 1, kind: input, shape index: {}]   ;;  %s149_s2 = inlined_call_operand.hbm [shape: f32[8,256], index: 2, kind: output, shape index: {}]  }
   0x1   :  { %8 = vsyncpa [#allocation4], 0  ;;  %s14_s11 = sshll.u32 %s147_s0, 4  ;;  %s119_s12 = smov [#allocation2]   ;;  %s15_s11 = int_to_ptr.hbm [resolvable:$true] %s14_s11 }
   0x2   :  { %s16_s13 = sshll.u32 %s119_s12, 4  ;;  %s17_s13 = int_to_ptr.vmem [resolvable:$true] %s16_s13 }
   0x3   :  { %19 = dma.hbm_to_vmem [thread:$0]  %s15_s11, 256, %s17_s13, [#allocation3]  }
   0x4   :  { %115 = dma.done.wait [#allocation3], 256  }
   0x5   :  { %116 = vsyncadd [#allocation3], 4294967040  ;;  %v120_v0 = vmov 0   ;;  %v26_v1 = vld [vmem:[%s148_s1] sm:$0xff]  ;;  %v121_v2 = vmov 1   ;;  %v28_v5 = vld [vmem:[#allocation2 + $0x8] sm:$0xff] }
   0x6   :  { %65 = vset.pattern.permute.xlu0 %v120_v0  ;;  %v27_v4 = vld [vmem:[#allocation2] sm:$0xff]  ;;  %s122_s0 = smov [#allocation5]   ;;  %s51_s19 = sshll.u32 %s149_s2, 4  ;;  %s52_s19 = int_to_ptr.hbm [resolvable:$true] %s51_s19 }
   0x7   :  { %31 = vperm.xlu0 %65, %v26_v1   ;;  %s49_s16 = sshll.u32 %s122_s0, 4  ;;  %s50_s16 = int_to_ptr.vmem [resolvable:$true] %s49_s16 }
   0xf   :  { %66 = vset.pattern.permute.xlu0 %v121_v2 }
  0x10   :  { %37 = vperm.xlu0 %66, %v26_v1  }
  0x79   :  { %v32_v3 = vpop.permute.xlu0 %31 }
  0x7a   :  { %v34_v6 = vmul.f32 %v32_v3, %v27_v4  ;;  %v35_v7 = vmul.f32 %v32_v3, %v28_v5 }
  0x82   :  { %v38_v8 = vpop.permute.xlu0 %37 }
  0x83   :  { %v40_v9 = vadd.f32 %v38_v8, %v34_v6  ;;  %v41_v10 = vadd.f32 %v38_v8, %v35_v7 }
  0x85   :  { %42 = vst [vmem:[#allocation5] sm:$0xff] %v40_v9 }
  0x86   :  { %43 = vst [vmem:[#allocation5 + $0x8] sm:$0xff] %v41_v10 }
  0x87   :  { %54 = dma.vmem_to_hbm [thread:$0]  %s50_s16, 256, %s52_s19, [#allocation4]  }
  0x88   :  { %117 = dma.done.wait [#allocation4], 256  }
  0x89   :  { %118 = vsyncadd [#allocation4], 4294967040 }
  0x8a   :  { %59 = vsyncpa [#allocation3], 1 }
  0x8b   :  { %60 = vsyncpa [#allocation4], 1 }

</bundles_post_ra>
